<compile_context>
chip_gen: v7x
topology: tpu7x:2x2x1
jax: 0.10.0
libtpu: 0.0.40
codegen_flags: <defaults>
</compile_context>

<pallas_src>
import jax
import jax.numpy as jnp
from jax.experimental import pallas as pl
from jax.experimental.pallas import tpu as pltpu


def _round_up(x, m):
    return (x + m - 1) // m * m


def actor_kernel(x_ref, w1_ref, b1_ref, w2_ref, b2_ref, w3_ref, b3_ref, o_ref):
    act_dim = o_ref.shape[1]

    # Layer 1: Linear + ReLU (bf16 operands, f32 accumulation; store bf16 activation)
    h1 = jnp.dot(x_ref[...], w1_ref[...], preferred_element_type=jnp.float32)
    h1 = jnp.maximum(h1 + b1_ref[...], 0.0).astype(jnp.bfloat16)

    # Layer 2: Linear + ReLU
    h2 = jnp.dot(h1, w2_ref[...], preferred_element_type=jnp.float32)
    h2 = jnp.maximum(h2 + b2_ref[...], 0.0).astype(jnp.bfloat16)

    # Layer 3: Linear + Tanh, then drop the padded lanes before the store so the
    # output HBM writeback is only the logical act_dim columns.
    h3 = jnp.dot(h2, w3_ref[...], preferred_element_type=jnp.float32)
    y = jnp.tanh(h3 + b3_ref[...])
    o_ref[...] = y[:, :act_dim]


def init_actor_params(key, obs_dim, act_dim, hidden_dim=400):
    """Deterministic f32 init mirroring PyTorch nn.Linear default
    (U(-1/sqrt(fan_in), +1/sqrt(fan_in))).  Weights stored as (in, out)."""
    ks = jax.random.split(key, 6)

    def linear(kw, kb, fan_in, fan_out):
        bound = 1.0 / jnp.sqrt(jnp.float32(fan_in))
        w = jax.random.uniform(kw, (fan_in, fan_out), jnp.float32, -bound, bound)
        b = jax.random.uniform(kb, (1, fan_out), jnp.float32, -bound, bound)
        return w, b

    w1, b1 = linear(ks[0], ks[1], obs_dim, hidden_dim)
    w2, b2 = linear(ks[2], ks[3], hidden_dim, hidden_dim)
    w3, b3 = linear(ks[4], ks[5], hidden_dim, act_dim)
    return {"w1": w1, "b1": b1, "w2": w2, "b2": b2, "w3": w3, "b3": b3,
            "obs_dim": obs_dim, "act_dim": act_dim, "hidden_dim": hidden_dim}


def prepare_actor_params(params):
    """Pad hidden dim (and w3/b3 lanes) to multiples of 128 with zeros
    (semantics-neutral) and cast weights to bf16 to halve HBM traffic.
    Biases stay f32 (tiny)."""
    hid = params["hidden_dim"]
    act = params["act_dim"]
    hid_p = _round_up(hid, 128)
    act_p = _round_up(act, 128)

    def pad(a, rows, cols):
        return jnp.pad(a, ((0, rows - a.shape[0]), (0, cols - a.shape[1])))

    w1 = pad(params["w1"], params["w1"].shape[0], hid_p).astype(jnp.bfloat16)
    b1 = pad(params["b1"], 1, hid_p)
    w2 = pad(params["w2"], hid_p, hid_p).astype(jnp.bfloat16)
    b2 = pad(params["b2"], 1, hid_p)
    w3 = pad(params["w3"], hid_p, act_p).astype(jnp.bfloat16)
    b3 = pad(params["b3"], 1, act_p)
    return {"w1": w1, "b1": b1, "w2": w2, "b2": b2, "w3": w3, "b3": b3,
            "obs_dim": params["obs_dim"], "act_dim": act,
            "act_dim_padded": act_p, "hidden_dim_padded": hid_p}


def actor_forward(x, prepped, *, block_m=512):
    """x: (B, obs_dim) f32 or bf16. prepped: output of prepare_actor_params.
    Returns (B, act_dim) f32."""
    w1, b1 = prepped["w1"], prepped["b1"]
    w2, b2 = prepped["w2"], prepped["b2"]
    w3, b3 = prepped["w3"], prepped["b3"]
    B, obs_dim = x.shape
    act_dim = prepped["act_dim"]
    hid_p = prepped["hidden_dim_padded"]
    act_p = prepped["act_dim_padded"]

    # bf16 x halves its DMA bytes; free if the caller already produces bf16.
    if x.dtype != jnp.bfloat16:
        x = x.astype(jnp.bfloat16)

    # Batch tile: up to block_m rows per grid step; tiny batches use the whole
    # batch as a single (full-array) block.
    tm = min(block_m, _round_up(B, 8))
    if tm >= B:
        tm = B
    grid = (pl.cdiv(B, tm),)

    full = lambda i: (0, 0)  # weights/biases: one block, VMEM-resident across steps

    flops = 2 * B * (obs_dim * hid_p + hid_p * hid_p + hid_p * act_p)
    bytes_accessed = (B * obs_dim * 2 + B * act_dim * 4
                      + (w1.size + w2.size + w3.size) * 2
                      + (b1.size + b2.size + b3.size) * 4)

    out = pl.pallas_call(
        actor_kernel,
        out_shape=jax.ShapeDtypeStruct((B, act_dim), jnp.float32),
        grid=grid,
        in_specs=[
            pl.BlockSpec((tm, obs_dim), lambda i: (i, 0)),   # x: tiled over batch
            pl.BlockSpec(w1.shape, full),
            pl.BlockSpec(b1.shape, full),
            pl.BlockSpec(w2.shape, full),
            pl.BlockSpec(b2.shape, full),
            pl.BlockSpec(w3.shape, full),
            pl.BlockSpec(b3.shape, full),
        ],
        # Logical-width output: 32 B/row writeback, no post-kernel slice op.
        out_specs=pl.BlockSpec((tm, act_dim), lambda i: (i, 0)),
        compiler_params=pltpu.CompilerParams(
            dimension_semantics=("parallel",),      # shards batch across TCs on v7x
            vmem_limit_bytes=16 * 1024 * 1024,      # working set ~6 MiB at tm=512
        ),
        cost_estimate=pl.CostEstimate(
            flops=flops, transcendentals=B * act_p,
            bytes_accessed=bytes_accessed),
    )(x, w1, b1, w2, b2, w3, b3)

    return out


if __name__ == "__main__":
    key = jax.random.PRNGKey(0)
    k_params, k_x = jax.random.split(key)

    batch, obs_dim, act_dim, hidden_dim = 2, 16, 8, 400
    raw = init_actor_params(k_params, obs_dim, act_dim, hidden_dim)
    prepped = prepare_actor_params(raw)
    x = jax.random.normal(k_x, (batch, obs_dim), jnp.float32)

    out = actor_forward(x, prepped)
    out = jax.block_until_ready(out)

    # Reference 1: same bf16-weight/activation forward in plain JAX (tight tol).
    def ref_bf16(x):
        h = jnp.dot(x.astype(jnp.bfloat16), prepped["w1"],
                    preferred_element_type=jnp.float32) + prepped["b1"]
        h = jnp.maximum(h, 0.0).astype(jnp.bfloat16)
        h = jnp.dot(h, prepped["w2"],
                    preferred_element_type=jnp.float32) + prepped["b2"]
        h = jnp.maximum(h, 0.0).astype(jnp.bfloat16)
        h = jnp.dot(h, prepped["w3"],
                    preferred_element_type=jnp.float32) + prepped["b3"]
        return jnp.tanh(h)[:, :act_dim]

    # Reference 2: original full-f32 PyTorch-equivalent forward (loose tolerance,
    # accounts for the bf16 weight/activation cast).
    def ref_f32(x):
        h = jnp.maximum(x @ raw["w1"] + raw["b1"], 0.0)
        h = jnp.maximum(h @ raw["w2"] + raw["b2"], 0.0)
        return jnp.tanh(h @ raw["w3"] + raw["b3"])

    assert out.shape == (batch, act_dim)
    assert bool(jnp.all(jnp.abs(out) <= 1.0 + 1e-6))
    assert bool(jnp.allclose(out, ref_bf16(x), atol=2e-3, rtol=2e-3))
    assert bool(jnp.allclose(out, ref_f32(x), atol=5e-2, rtol=5e-2))

    print("KERNEL_OK")
</pallas_src>

<mosaic_0001>
module attributes {stable_mosaic.version = 11 : i64} {
  func.func @actor_kernel(%arg0: i32, %arg1: memref<2x16xbf16, #tpu.memory_space<vmem>>, %arg2: memref<16x512xbf16, #tpu.memory_space<vmem>>, %arg3: memref<1x512xf32, #tpu.memory_space<vmem>>, %arg4: memref<512x512xbf16, #tpu.memory_space<vmem>>, %arg5: memref<1x512xf32, #tpu.memory_space<vmem>>, %arg6: memref<512x128xbf16, #tpu.memory_space<vmem>>, %arg7: memref<1x128xf32, #tpu.memory_space<vmem>>, %arg8: memref<2x8xf32, #tpu.memory_space<vmem>>) attributes {dimension_semantics = [#tpu.dimension_semantics<parallel>], iteration_bounds = array<i64: 1>, scalar_prefetch = 0 : i64, scratch_operands = 0 : i64, tpu.core_type = #tpu.core_type<tc>, window_params = [{transform_indices = @transform_0, window_bounds = array<i64: 2, 16>}, {pipeline_mode = #tpu.pipeline_mode<synchronous>, transform_indices = @transform_1, window_bounds = array<i64: 16, 512>}, {pipeline_mode = #tpu.pipeline_mode<synchronous>, transform_indices = @transform_2, window_bounds = array<i64: 1, 512>}, {pipeline_mode = #tpu.pipeline_mode<synchronous>, transform_indices = @transform_3, window_bounds = array<i64: 512, 512>}, {pipeline_mode = #tpu.pipeline_mode<synchronous>, transform_indices = @transform_4, window_bounds = array<i64: 1, 512>}, {pipeline_mode = #tpu.pipeline_mode<synchronous>, transform_indices = @transform_5, window_bounds = array<i64: 512, 128>}, {pipeline_mode = #tpu.pipeline_mode<synchronous>, transform_indices = @transform_6, window_bounds = array<i64: 1, 128>}, {transform_indices = @transform_7, window_bounds = array<i64: 2, 8>}]} {
    %c0 = arith.constant 0 : index
    %c0_0 = arith.constant 0 : index
    %0 = vector.load %arg1[%c0, %c0_0] : memref<2x16xbf16, #tpu.memory_space<vmem>>, vector<2x16xbf16>
    %c0_1 = arith.constant 0 : index
    %c0_2 = arith.constant 0 : index
    %1 = vector.load %arg2[%c0_1, %c0_2] : memref<16x512xbf16, #tpu.memory_space<vmem>>, vector<16x512xbf16>
    %cst = arith.constant dense<0.000000e+00> : vector<2x512xf32>
    %2 = tpu.matmul %0, %1, %cst {dimension_numbers = #tpu.dot_dimension_numbers<[1], [0], [0], [1], [0, 0, 1, 1], [], []>} : vector<2x16xbf16>, vector<16x512xbf16>, vector<2x512xf32> -> vector<2x512xf32>
    %c0_3 = arith.constant 0 : index
    %c0_4 = arith.constant 0 : index
    %3 = vector.load %arg3[%c0_3, %c0_4] : memref<1x512xf32, #tpu.memory_space<vmem>>, vector<1x512xf32>
    %4 = vector.broadcast %3 : vector<1x512xf32> to vector<2x512xf32>
    %5 = arith.addf %2, %4 : vector<2x512xf32>
    %cst_5 = arith.constant 0.000000e+00 : f32
    %6 = vector.broadcast %cst_5 : f32 to vector<2x512xf32>
    %7 = arith.maximumf %5, %6 : vector<2x512xf32>
    %8 = arith.truncf %7 : vector<2x512xf32> to vector<2x512xbf16>
    %c0_6 = arith.constant 0 : index
    %c0_7 = arith.constant 0 : index
    %9 = vector.load %arg4[%c0_6, %c0_7] : memref<512x512xbf16, #tpu.memory_space<vmem>>, vector<512x512xbf16>
    %cst_8 = arith.constant dense<0.000000e+00> : vector<2x512xf32>
    %10 = tpu.matmul %8, %9, %cst_8 {dimension_numbers = #tpu.dot_dimension_numbers<[1], [0], [0], [1], [0, 0, 1, 1], [], []>} : vector<2x512xbf16>, vector<512x512xbf16>, vector<2x512xf32> -> vector<2x512xf32>
    %c0_9 = arith.constant 0 : index
    %c0_10 = arith.constant 0 : index
    %11 = vector.load %arg5[%c0_9, %c0_10] : memref<1x512xf32, #tpu.memory_space<vmem>>, vector<1x512xf32>
    %12 = vector.broadcast %11 : vector<1x512xf32> to vector<2x512xf32>
    %13 = arith.addf %10, %12 : vector<2x512xf32>
    %cst_11 = arith.constant 0.000000e+00 : f32
    %14 = vector.broadcast %cst_11 : f32 to vector<2x512xf32>
    %15 = arith.maximumf %13, %14 : vector<2x512xf32>
    %16 = arith.truncf %15 : vector<2x512xf32> to vector<2x512xbf16>
    %c0_12 = arith.constant 0 : index
    %c0_13 = arith.constant 0 : index
    %17 = vector.load %arg6[%c0_12, %c0_13] : memref<512x128xbf16, #tpu.memory_space<vmem>>, vector<512x128xbf16>
    %cst_14 = arith.constant dense<0.000000e+00> : vector<2x128xf32>
    %18 = tpu.matmul %16, %17, %cst_14 {dimension_numbers = #tpu.dot_dimension_numbers<[1], [0], [0], [1], [0, 0, 1, 1], [], []>} : vector<2x512xbf16>, vector<512x128xbf16>, vector<2x128xf32> -> vector<2x128xf32>
    %c0_15 = arith.constant 0 : index
    %c0_16 = arith.constant 0 : index
    %19 = vector.load %arg7[%c0_15, %c0_16] : memref<1x128xf32, #tpu.memory_space<vmem>>, vector<1x128xf32>
    %20 = vector.broadcast %19 : vector<1x128xf32> to vector<2x128xf32>
    %21 = arith.addf %18, %20 : vector<2x128xf32>
    %22 = math.tanh %21 : vector<2x128xf32>
    %23 = vector.extract_strided_slice %22 {offsets = [0, 0], sizes = [2, 8], strides = [1, 1]} : vector<2x128xf32> to vector<2x8xf32>
    %c0_17 = arith.constant 0 : index
    %c0_18 = arith.constant 0 : index
    %24 = vector.load %arg8[%c0_17, %c0_18] : memref<2x8xf32, #tpu.memory_space<vmem>>, vector<2x8xf32>
    tpu.vector_store %arg8[%c0_17, %c0_18], %23 {strides = array<i32>} : memref<2x8xf32, #tpu.memory_space<vmem>>, vector<2x8xf32>,
    return
  }
  func.func @transform_0(%arg0: i32) -> (i32, i32) {
    %c0_i32 = arith.constant 0 : i32
    %c0_i32_0 = arith.constant 0 : i32
    return %arg0, %c0_i32 : i32, i32
  }
  func.func @transform_1(%arg0: i32) -> (i32, i32) {
    %c0_i32 = arith.constant 0 : i32
    %c0_i32_0 = arith.constant 0 : i32
    %c0_i32_1 = arith.constant 0 : i32
    return %c0_i32, %c0_i32_0 : i32, i32
  }
  func.func @transform_2(%arg0: i32) -> (i32, i32) {
    %c0_i32 = arith.constant 0 : i32
    %c0_i32_0 = arith.constant 0 : i32
    %c0_i32_1 = arith.constant 0 : i32
    return %c0_i32, %c0_i32_0 : i32, i32
  }
  func.func @transform_3(%arg0: i32) -> (i32, i32) {
    %c0_i32 = arith.constant 0 : i32
    %c0_i32_0 = arith.constant 0 : i32
    %c0_i32_1 = arith.constant 0 : i32
    return %c0_i32, %c0_i32_0 : i32, i32
  }
  func.func @transform_4(%arg0: i32) -> (i32, i32) {
    %c0_i32 = arith.constant 0 : i32
    %c0_i32_0 = arith.constant 0 : i32
    %c0_i32_1 = arith.constant 0 : i32
    return %c0_i32, %c0_i32_0 : i32, i32
  }
  func.func @transform_5(%arg0: i32) -> (i32, i32) {
    %c0_i32 = arith.constant 0 : i32
    %c0_i32_0 = arith.constant 0 : i32
    %c0_i32_1 = arith.constant 0 : i32
    return %c0_i32, %c0_i32_0 : i32, i32
  }
  func.func @transform_6(%arg0: i32) -> (i32, i32) {
    %c0_i32 = arith.constant 0 : i32
    %c0_i32_0 = arith.constant 0 : i32
    %c0_i32_1 = arith.constant 0 : i32
    return %c0_i32, %c0_i32_0 : i32, i32
  }
  func.func @transform_7(%arg0: i32) -> (i32, i32) {
    %c0_i32 = arith.constant 0 : i32
    %c0_i32_0 = arith.constant 0 : i32
    return %arg0, %c0_i32 : i32, i32
  }
}

</mosaic_0001>

<bundles_post_ra>
// kernel: tpu_custom_call.1
= control target key start
LH: loop header
LB: loop body
LE: loop exit
PB: predicated region body
PF: predicated region fallthrough
CT: control target
= control target key end

     0   :  { %12 = vsyncpa [#allocation3], 0  ;;  %s2286_s0 = inlined_call_operand.hbm [shape: bf16[2,16], index: 0, kind: input, shape index: {}]   ;;  %s2287_s1 = inlined_call_operand.hbm [shape: bf16[16,512], index: 1, kind: input, shape index: {}]   ;;  %s2288_s2 = inlined_call_operand.vmem [shape: f32[1,512], index: 2, kind: input, shape index: {}]   ;;  %s2289_s3 = inlined_call_operand.hbm [shape: bf16[512,512], index: 3, kind: input, shape index: {}]   ;;  %s2290_s4 = inlined_call_operand.vmem [shape: f32[1,512], index: 4, kind: input, shape index: {}]   ;;  %s2291_s5 = inlined_call_operand.hbm [shape: bf16[512,128], index: 5, kind: input, shape index: {}]   ;;  %s2292_s6 = inlined_call_operand.vmem [shape: f32[1,128], index: 6, kind: input, shape index: {}]   ;;  %s2293_s7 = inlined_call_operand.hbm [shape: f32[2,8], index: 7, kind: output, shape index: {}]  }
   0x1   :  { %13 = vsyncpa [#allocation6], 0 }
   0x2   :  { %14 = vsyncpa [#allocation9], 0 }
   0x3   :  { %15 = vsyncpa [#allocation4], 0  ;;  %s2130_s24 = smov [#allocation5]   ;;  %s2012_s28 = scalar_lea.hbm %s2287_s1, 512 }
   0x4   :  { %s31_s25 = sshll.u32 %s2130_s24, 4  ;;  %p2013_p0 = scmp.ne.s32.totalorder %s2287_s1, %s2012_s28  ;;  %s32_s25 = int_to_ptr.vmem [resolvable:$true] %s31_s25 }
   0x5   :  { %p2016_p1 = scmp.lt.u32.totalorder %s2012_s28, %s2287_s1 }
   0x7   :  { %p2018_p2 = pnand %p2016_p1, %p2013_p0 }
   0x9   :  { %2021 = shalt.err (!%p2018_p2)
}
   0xa   :  { %s2022_s10 = scalar_lea.vmem %s32_s25, 512  ;;  %p2027_p4 = scmp.lt.s32.totalorder %s32_s25, %s32_s25 }
   0xb   :  { %p2023_p3 = scmp.ne.s32.totalorder %s32_s25, %s2022_s10  ;;  %p2028_p5 = scmp.lt.s32.totalorder %s2022_s10, %s2022_s10 }
   0xd   :  { %p2029_p6 = por %p2028_p5, %p2027_p4 }
   0xf   :  { %p2030_p7 = pnand %p2029_p6, %p2023_p3 }
  0x11   :  { %2033 = shalt.err (!%p2030_p7)
}
  0x12   :  { %s2131_s11 = smov 256   ;;  %s2132_s12 = smov 16  }
  0x13   :  { %37 = dma.hbm_to_vmem [thread:$0]  %s2287_s1, 512, %s32_s25, [#allocation6], %s2131_s11, %s2131_s11, %s2132_s12  }
  0x14   :  { %s2133_s15 = smov [#allocation2]   ;;  %s2134_s17 = smov [#allocation7]  }
  0x15   :  { %s22_s16 = sshll.u32 %s2133_s15, 4  ;;  %s45_s18 = sshll.u32 %s2134_s17, 4  ;;  %s23_s16 = int_to_ptr.vmem [resolvable:$true] %s22_s16  ;;  %s46_s18 = int_to_ptr.vmem [resolvable:$true] %s45_s18 }
  0x16   :  { %s2034_s21 = scalar_lea.hbm %s2286_s0, 16 }
  0x17   :  { %p2035_p8 = scmp.ne.s32.totalorder %s2286_s0, %s2034_s21  ;;  %p2038_p9 = scmp.lt.u32.totalorder %s2034_s21, %s2286_s0 }
  0x19   :  { %p2040_p10 = pnand %p2038_p9, %p2035_p8 }
  0x1b   :  { %2043 = shalt.err (!%p2040_p10)
}
  0x1c   :  { %s2044_s1 = scalar_lea.vmem %s23_s16, 16  ;;  %s2048_s25 = scalar_lea.vmem %s23_s16, 32 }
  0x1d   :  { %p2045_p11 = scmp.ne.s32.totalorder %s23_s16, %s2044_s1  ;;  %p2049_p12 = scmp.lt.s32.totalorder %s23_s16, %s23_s16 }
  0x1e   :  { %p2050_p13 = scmp.lt.s32.totalorder %s2048_s25, %s2044_s1 }
  0x20   :  { %p2051_p0 = por %p2050_p13, %p2049_p12 }
  0x22   :  { %p2052_p1 = pnand %p2051_p0, %p2045_p11 }
  0x24   :  { %2055 = shalt.err (!%p2052_p1)
}
  0x25   :  { %25 = dma.hbm_to_vmem [thread:$0]  %s2286_s0, 16, %s23_s16, [#allocation3]  }
  0x26   :  { %s2056_s8 = scalar_lea.hbm %s2289_s3, 16384 }
  0x27   :  { %p2057_p2 = scmp.ne.s32.totalorder %s2289_s3, %s2056_s8  ;;  %p2060_p3 = scmp.lt.u32.totalorder %s2056_s8, %s2289_s3 }
  0x29   :  { %p2062_p4 = pnand %p2060_p3, %p2057_p2 }
  0x2b   :  { %2065 = shalt.err (!%p2062_p4)
}
  0x2c   :  { %s2066_s15 = scalar_lea.vmem %s46_s18, 16384  ;;  %p2071_p6 = scmp.lt.s32.totalorder %s46_s18, %s46_s18 }
  0x2d   :  { %p2067_p5 = scmp.ne.s32.totalorder %s46_s18, %s2066_s15  ;;  %p2072_p7 = scmp.lt.s32.totalorder %s2066_s15, %s2066_s15 }
  0x2f   :  { %p2073_p8 = por %p2072_p7, %p2071_p6 }
  0x31   :  { %p2074_p9 = pnand %p2073_p8, %p2067_p5 }
  0x33   :  { %2077 = shalt.err (!%p2074_p9)
}
  0x34   :  { %51 = dma.hbm_to_vmem [thread:$0]  %s2289_s3, 16384, %s46_s18, [#allocation6], %s2131_s11, %s2131_s11, %s2132_s12  }
  0x35   :  { %s2135_s17 = smov [#allocation8]   ;;  %s2078_s22 = scalar_lea.hbm %s2291_s5, 4096 }
  0x36   :  { %s59_s19 = sshll.u32 %s2135_s17, 4  ;;  %p2079_p10 = scmp.ne.s32.totalorder %s2291_s5, %s2078_s22  ;;  %s60_s19 = int_to_ptr.vmem [resolvable:$true] %s59_s19 }
  0x37   :  { %p2082_p11 = scmp.lt.u32.totalorder %s2078_s22, %s2291_s5 }
  0x39   :  { %p2084_p12 = pnand %p2082_p11, %p2079_p10 }
  0x3b   :  { %2087 = shalt.err (!%p2084_p12)
}
  0x3c   :  { %s2088_s25 = scalar_lea.vmem %s60_s19, 4096  ;;  %p2093_p0 = scmp.lt.s32.totalorder %s60_s19, %s60_s19 }
  0x3d   :  { %p2089_p13 = scmp.ne.s32.totalorder %s60_s19, %s2088_s25  ;;  %p2094_p1 = scmp.lt.s32.totalorder %s2088_s25, %s2088_s25 }
  0x3f   :  { %p2095_p2 = por %p2094_p1, %p2093_p0 }
  0x41   :  { %p2096_p3 = pnand %p2095_p2, %p2089_p13 }
  0x43   :  { %2099 = shalt.err (!%p2096_p3)
}
  0x44   :  { %s2136_s3 = smov 64   ;;  %s2137_s11 = smov 4  }
  0x45   :  { %65 = dma.hbm_to_vmem [thread:$0]  %s2291_s5, 4096, %s60_s19, [#allocation9], %s2136_s3, %s2136_s3, %s2137_s11  }
  0x46   :  { %2122 = dma.done.wait [#allocation3], 16  }
  0x47   :  { %2123 = vsyncadd [#allocation3], 4294967280 }
  0x48   :  { %2124 = dma.done.wait [#allocation6], 16896  }
  0x49   :  { %2125 = vsyncadd [#allocation6], 4294950400 }
  0x4a   :  { %2126 = dma.done.wait [#allocation9], 4096  }
  0x4b   :  { %2127 = vsyncadd [#allocation9], 4294963200  ;;  %v2138_v0 = vmov 0   ;;  %v1780_v1 = vld [vmem:[#allocation5 + $0x4] ss:$16 sps:$4 sm:$0xff]   ;;  %vm128_vm0 = vcmask 130048  }
  0x4c   :  { %164 = vmatprep.mubr.bf16.mxu0 %v2138_v0  ;;  %205 = vmatprep.mubr.bf16.mxu1 %v2138_v0  ;;  %v1782_v2 = vld [vmem:[#allocation5] ss:$16 sps:$4 sm:$0xff]   ;;  %v81_v3 = vld [vmem:[#allocation2] sm:$0x1]  ;;  %v1785_v5 = vld [vmem:[#allocation5 + $0x8] ss:$16 sps:$4 sm:$0xff]  }
  0x4d   :  { %132 = vmatprep.subr.bf16.mxu0 %v1780_v1  ;;  %v1783_v4 = vld [vmem:[#allocation5 + $0xc] ss:$16 sps:$4 sm:$0xff]   ;;  %v1786_v6 = vld [vmem:[#allocation7] ss:$16 sps:$4 sm:$0xff]   ;;  %v1788_v7 = vld [vmem:[#allocation7 + $0x4] ss:$16 sps:$4 sm:$0xff]  }
  0x4e   :  { %133 = vmatpush1.bf16.msra.mxu0 %v1782_v2  ;;  %173 = vmatprep.subr.bf16.mxu1 %v1783_v4  ;;  %v1789_v8 = vld [vmem:[#allocation7 + $0x8] ss:$16 sps:$4 sm:$0xff]   ;;  %v1791_v9 = vld [vmem:[#allocation7 + $0xc] ss:$16 sps:$4 sm:$0xff]   ;;  %v1794_v10 = vld [vmem:[#allocation7 + $0x24] ss:$16 sps:$4 sm:$0xff]  }
  0x4f   :  { %174 = vmatpush1.bf16.msra.mxu1 %v1785_v5  ;;  %1012 = vmatprep.subr.bf16.mxu0 %v1788_v7  ;;  %v1792_v11 = vld [vmem:[#allocation7 + $0x20] ss:$16 sps:$4 sm:$0xff]   ;;  %v1797_v12 = vld [vmem:[#allocation7 + $0x2c] ss:$16 sps:$4 sm:$0xff]   ;;  %v1795_v13 = vld [vmem:[#allocation7 + $0x28] ss:$16 sps:$4 sm:$0xff]  }
  0x50   :  { %1094 = vmatprep.subr.bf16.mxu1 %v1791_v9  ;;  %v1800_v14 = vld [vmem:[#allocation7 + $0x44] ss:$16 sps:$4 sm:$0xff]   ;;  %v1803_v15 = vld [vmem:[#allocation7 + $0x4c] ss:$16 sps:$4 sm:$0xff]   ;;  %v1798_v16 = vld [vmem:[#allocation7 + $0x40] ss:$16 sps:$4 sm:$0xff]  }
  0x51   :  { %1551 = vmatmul.mubr.msk.bf16.vlgmr.msra.gmra.mrb[0].mxu0 %vm128_vm0, %v81_v3  ;;  %v1806_v17 = vld [vmem:[#allocation7 + $0x64] ss:$16 sps:$4 sm:$0xff]   ;;  %v1801_v18 = vld [vmem:[#allocation7 + $0x48] ss:$16 sps:$4 sm:$0xff]   ;;  %v1809_v19 = vld [vmem:[#allocation7 + $0x6c] ss:$16 sps:$4 sm:$0xff]  }
  0x52   :  { %1013 = vmatpush1.bf16.msra.mxu0 %v1786_v6  ;;  %1552 = vmatmul.mubr.msk.bf16.vlgmr.msra.gmra.mrb[0].mxu1 %vm128_vm0, %v81_v3  ;;  %v1804_v20 = vld [vmem:[#allocation7 + $0x60] ss:$16 sps:$4 sm:$0xff]   ;;  %v1812_v21 = vld [vmem:[#allocation7 + $0x84] ss:$16 sps:$4 sm:$0xff]   ;;  %v1807_v22 = vld [vmem:[#allocation7 + $0x68] ss:$16 sps:$4 sm:$0xff]  }
  0x53   :  { %1014 = vmatprep.subr.bf16.mxu0 %v1794_v10  ;;  %1095 = vmatpush1.bf16.msra.mxu1 %v1789_v8  ;;  %v1815_v23 = vld [vmem:[#allocation7 + $0x8c] ss:$16 sps:$4 sm:$0xff]   ;;  %v1810_v24 = vld [vmem:[#allocation7 + $0x80] ss:$16 sps:$4 sm:$0xff]   ;;  %v1818_v25 = vld [vmem:[#allocation7 + $0xa4] ss:$16 sps:$4 sm:$0xff]   ;;  %v88_v8 = vlaneseq }
  0x54   :  { %1096 = vmatprep.subr.bf16.mxu1 %v1797_v12  ;;  %v1813_v26 = vld [vmem:[#allocation7 + $0x88] ss:$16 sps:$4 sm:$0xff]   ;;  %v1821_v27 = vld [vmem:[#allocation7 + $0xac] ss:$16 sps:$4 sm:$0xff]   ;;  %v1816_v28 = vld [vmem:[#allocation7 + $0xa0] ss:$16 sps:$4 sm:$0xff]  }
  0x55   :  { %v1824_v29 = vld [vmem:[#allocation7 + $0xc4] ss:$16 sps:$4 sm:$0xff]   ;;  %v1819_v30 = vld [vmem:[#allocation7 + $0xa8] ss:$16 sps:$4 sm:$0xff]   ;;  %v1827_v31 = vld [vmem:[#allocation7 + $0xcc] ss:$16 sps:$4 sm:$0xff]  }
  0x56   :  { %1015 = vmatpush1.bf16.msra.mxu0 %v1792_v11  ;;  %v1822_v32 = vld [vmem:[#allocation7 + $0xc0] ss:$16 sps:$4 sm:$0xff]   ;;  %v1830_v33 = vld [vmem:[#allocation7 + $0xe4] ss:$16 sps:$4 sm:$0xff]   ;;  %v1825_v34 = vld [vmem:[#allocation7 + $0xc8] ss:$16 sps:$4 sm:$0xff]  }
  0x57   :  { %1016 = vmatprep.subr.bf16.mxu0 %v1800_v14  ;;  %1097 = vmatpush1.bf16.msra.mxu1 %v1795_v13  ;;  %v1833_v35 = vld [vmem:[#allocation7 + $0xec] ss:$16 sps:$4 sm:$0xff]   ;;  %v1828_v36 = vld [vmem:[#allocation7 + $0xe0] ss:$16 sps:$4 sm:$0xff]   ;;  %v1836_v37 = vld [vmem:[#allocation7 + $0x104] ss:$16 sps:$4 sm:$0xff]  }
  0x58   :  { %1098 = vmatprep.subr.bf16.mxu1 %v1803_v15  ;;  %v1831_v38 = vld [vmem:[#allocation7 + $0xe8] ss:$16 sps:$4 sm:$0xff]   ;;  %v1839_v39 = vld [vmem:[#allocation7 + $0x10c] ss:$16 sps:$4 sm:$0xff]   ;;  %v1834_v40 = vld [vmem:[#allocation7 + $0x100] ss:$16 sps:$4 sm:$0xff]  }
  0x59   :  { %v1842_v41 = vld [vmem:[#allocation7 + $0x124] ss:$16 sps:$4 sm:$0xff]   ;;  %v1837_v42 = vld [vmem:[#allocation7 + $0x108] ss:$16 sps:$4 sm:$0xff]   ;;  %v1840_v43 = vld [vmem:[#allocation7 + $0x120] ss:$16 sps:$4 sm:$0xff]  }
  0x5a   :  { %1017 = vmatpush1.bf16.msra.mxu0 %v1798_v16  ;;  %v1845_v44 = vld [vmem:[#allocation7 + $0x12c] ss:$16 sps:$4 sm:$0xff]   ;;  %v1843_v45 = vld [vmem:[#allocation7 + $0x128] ss:$16 sps:$4 sm:$0xff]   ;;  %v1848_v46 = vld [vmem:[#allocation7 + $0x144] ss:$16 sps:$4 sm:$0xff]  }
  0x5b   :  { %1018 = vmatprep.subr.bf16.mxu0 %v1806_v17  ;;  %1099 = vmatpush1.bf16.msra.mxu1 %v1801_v18  ;;  %v1851_v47 = vld [vmem:[#allocation7 + $0x14c] ss:$16 sps:$4 sm:$0xff]   ;;  %v1846_v48 = vld [vmem:[#allocation7 + $0x140] ss:$16 sps:$4 sm:$0xff]   ;;  %v1854_v49 = vld [vmem:[#allocation7 + $0x164] ss:$16 sps:$4 sm:$0xff]  }
  0x5c   :  { %1100 = vmatprep.subr.bf16.mxu1 %v1809_v19  ;;  %v1849_v50 = vld [vmem:[#allocation7 + $0x148] ss:$16 sps:$4 sm:$0xff]   ;;  %v1857_v51 = vld [vmem:[#allocation7 + $0x16c] ss:$16 sps:$4 sm:$0xff]   ;;  %v1852_v52 = vld [vmem:[#allocation7 + $0x160] ss:$16 sps:$4 sm:$0xff]  }
  0x5d   :  { %v1860_v53 = vld [vmem:[#allocation7 + $0x184] ss:$16 sps:$4 sm:$0xff]   ;;  %v1855_v54 = vld [vmem:[#allocation7 + $0x168] ss:$16 sps:$4 sm:$0xff]   ;;  %v1863_v55 = vld [vmem:[#allocation7 + $0x18c] ss:$16 sps:$4 sm:$0xff]  }
  0x5e   :  { %1019 = vmatpush1.bf16.msra.mxu0 %v1804_v20  ;;  %v1858_v56 = vld [vmem:[#allocation7 + $0x180] ss:$16 sps:$4 sm:$0xff]   ;;  %v1866_v57 = vld [vmem:[#allocation7 + $0x1a4] ss:$16 sps:$4 sm:$0xff]   ;;  %v1861_v58 = vld [vmem:[#allocation7 + $0x188] ss:$16 sps:$4 sm:$0xff]  }
  0x5f   :  { %1020 = vmatprep.subr.bf16.mxu0 %v1812_v21  ;;  %1101 = vmatpush1.bf16.msra.mxu1 %v1807_v22  ;;  %v1869_v59 = vld [vmem:[#allocation7 + $0x1ac] ss:$16 sps:$4 sm:$0xff]   ;;  %v1864_v60 = vld [vmem:[#allocation7 + $0x1a0] ss:$16 sps:$4 sm:$0xff]   ;;  %v1867_v61 = vld [vmem:[#allocation7 + $0x1a8] ss:$16 sps:$4 sm:$0xff]  }
  0x60   :  { %1102 = vmatprep.subr.bf16.mxu1 %v1815_v23  ;;  %v1872_v62 = vld [vmem:[#allocation7 + $0x1c4] ss:$16 sps:$4 sm:$0xff]   ;;  %v1875_v63 = vld [vmem:[#allocation7 + $0x1cc] ss:$16 sps:$4 sm:$0xff]   ;;  %v1870_v0 = vld [vmem:[#allocation7 + $0x1c0] ss:$16 sps:$4 sm:$0xff]  }
  0x61   :  { %v1873_v1 = vld [vmem:[#allocation7 + $0x1c8] ss:$16 sps:$4 sm:$0xff]   ;;  %v1878_v2 = vld [vmem:[#allocation7 + $0x1e4] ss:$16 sps:$4 sm:$0xff]   ;;  %v1881_v3 = vld [vmem:[#allocation7 + $0x1ec] ss:$16 sps:$4 sm:$0xff]  }
  0x62   :  { %1021 = vmatpush1.bf16.msra.mxu0 %v1810_v24  ;;  %v1876_v4 = vld [vmem:[#allocation7 + $0x1e0] ss:$16 sps:$4 sm:$0xff]   ;;  %v1879_v5 = vld [vmem:[#allocation7 + $0x1e8] ss:$16 sps:$4 sm:$0xff]   ;;  %v1884_v6 = vld [vmem:[#allocation7 + $0x204] ss:$16 sps:$4 sm:$0xff]  }
  0x63   :  { %1022 = vmatprep.subr.bf16.mxu0 %v1818_v25  ;;  %1103 = vmatpush1.bf16.msra.mxu1 %v1813_v26  ;;  %v1887_v7 = vld [vmem:[#allocation7 + $0x20c] ss:$16 sps:$4 sm:$0xff]   ;;  %v2234_v9 = vshrl.u32 %v88_v8, 7  ;;  %v1944_v8 = vld [vmem:[#allocation7 + $0x344] ss:$16 sps:$4 sm:$0xff]   ;;  %s2139_s30 = smov [#allocation10]  }
  0x64   :  { %1104 = vmatprep.subr.bf16.mxu1 %v1821_v27  ;;  %v2240_v11 = vld [vmem:[%s2288_s2] sm:$0xf]  ;;  %s1536_s8 = sshll.u32 %s2139_s30, 4  ;;  %vm1528_vm1 = vcmask 58368   ;;  %s1537_s8 = int_to_ptr.vmem [resolvable:$true] %s1536_s8 }
  0x65   :  { %v90_v10 = vsub.s32 0, %v2234_v9  ;;  %v94_v12 = vsub.s32 1, %v2234_v9  ;;  %v102_v13 = vsub.s32 3, %v2234_v9  ;;  %s2100_s9 = scalar_lea.vmem %s1537_s8, 32  ;;  %p2105_p5 = scmp.lt.s32.totalorder %s1537_s8, %s1537_s8 }
  0x66   :  { %1023 = vmatpush1.bf16.msra.mxu0 %v1816_v28  ;;  %p2101_p4 = scmp.ne.s32.totalorder %s1537_s8, %s2100_s9  ;;  %p2106_p6 = scmp.lt.s32.totalorder %s2100_s9, %s2100_s9 }
  0x67   :  { %1024 = vmatprep.subr.bf16.mxu0 %v1824_v29  ;;  %1105 = vmatpush1.bf16.msra.mxu1 %v1819_v30  ;;  %v91_v14 = vrot.slane %v2240_v11, %v90_v10  ;;  %v95_v15 = vrot.slane %v2240_v11, %v94_v12  ;;  %v103_v17 = vrot.slane %v2240_v11, %v102_v13 }
  0x68   :  { %1106 = vmatprep.subr.bf16.mxu1 %v1827_v31  ;;  %v1882_v31 = vld [vmem:[#allocation7 + $0x200] ss:$16 sps:$4 sm:$0xff]   ;;  %p2107_p7 = por %p2106_p6, %p2105_p5 }
  0x6a   :  { %1025 = vmatpush1.bf16.msra.mxu0 %v1822_v32  ;;  %v1885_v32 = vld [vmem:[#allocation7 + $0x208] ss:$16 sps:$4 sm:$0xff]   ;;  %p2108_p8 = pnand %p2107_p7, %p2101_p4 }
  0x6b   :  { %1026 = vmatprep.subr.bf16.mxu0 %v1830_v33  ;;  %1107 = vmatpush1.bf16.msra.mxu1 %v1825_v34 }
  0x6c   :  { %1108 = vmatprep.subr.bf16.mxu1 %v1833_v35  ;;  %v1890_v35 = vld [vmem:[#allocation7 + $0x224] ss:$16 sps:$4 sm:$0xff]  }
  0x6e   :  { %1027 = vmatpush1.bf16.msra.mxu0 %v1828_v36  ;;  %v1893_v36 = vld [vmem:[#allocation7 + $0x22c] ss:$16 sps:$4 sm:$0xff]  }
  0x6f   :  { %1028 = vmatprep.subr.bf16.mxu0 %v1836_v37  ;;  %1109 = vmatpush1.bf16.msra.mxu1 %v1831_v38  ;;  %v1888_v38 = vld [vmem:[#allocation7 + $0x220] ss:$16 sps:$4 sm:$0xff]  }
  0x70   :  { %1110 = vmatprep.subr.bf16.mxu1 %v1839_v39  ;;  %v1891_v39 = vld [vmem:[#allocation7 + $0x228] ss:$16 sps:$4 sm:$0xff]  }
  0x72   :  { %1029 = vmatpush1.bf16.msra.mxu0 %v1834_v40  ;;  %v1896_v40 = vld [vmem:[#allocation7 + $0x244] ss:$16 sps:$4 sm:$0xff]  }
  0x73   :  { %1030 = vmatprep.subr.bf16.mxu0 %v1842_v41  ;;  %1111 = vmatpush1.bf16.msra.mxu1 %v1837_v42  ;;  %v1899_v41 = vld [vmem:[#allocation7 + $0x24c] ss:$16 sps:$4 sm:$0xff]   ;;  %v1894_v42 = vld [vmem:[#allocation7 + $0x240] ss:$16 sps:$4 sm:$0xff]  }
  0x74   :  { %1112 = vmatprep.subr.bf16.mxu1 %v1845_v44  ;;  %v1902_v44 = vld [vmem:[#allocation7 + $0x264] ss:$16 sps:$4 sm:$0xff]  }
  0x76   :  { %1031 = vmatpush1.bf16.msra.mxu0 %v1840_v43  ;;  %v1897_v43 = vld [vmem:[#allocation7 + $0x248] ss:$16 sps:$4 sm:$0xff]  }
  0x77   :  { %1032 = vmatprep.subr.bf16.mxu0 %v1848_v46  ;;  %1113 = vmatpush1.bf16.msra.mxu1 %v1843_v45  ;;  %v1905_v45 = vld [vmem:[#allocation7 + $0x26c] ss:$16 sps:$4 sm:$0xff]   ;;  %v1900_v46 = vld [vmem:[#allocation7 + $0x260] ss:$16 sps:$4 sm:$0xff]  }
  0x78   :  { %1114 = vmatprep.subr.bf16.mxu1 %v1851_v47  ;;  %v1903_v47 = vld [vmem:[#allocation7 + $0x268] ss:$16 sps:$4 sm:$0xff]  }
  0x7a   :  { %1033 = vmatpush1.bf16.msra.mxu0 %v1846_v48  ;;  %v1908_v48 = vld [vmem:[#allocation7 + $0x284] ss:$16 sps:$4 sm:$0xff]  }
  0x7b   :  { %1034 = vmatprep.subr.bf16.mxu0 %v1854_v49  ;;  %1115 = vmatpush1.bf16.msra.mxu1 %v1849_v50  ;;  %v1911_v49 = vld [vmem:[#allocation7 + $0x28c] ss:$16 sps:$4 sm:$0xff]   ;;  %v1906_v50 = vld [vmem:[#allocation7 + $0x280] ss:$16 sps:$4 sm:$0xff]  }
  0x7c   :  { %1116 = vmatprep.subr.bf16.mxu1 %v1857_v51  ;;  %v1909_v51 = vld [vmem:[#allocation7 + $0x288] ss:$16 sps:$4 sm:$0xff]  }
  0x7e   :  { %1035 = vmatpush1.bf16.msra.mxu0 %v1852_v52  ;;  %v1914_v52 = vld [vmem:[#allocation7 + $0x2a4] ss:$16 sps:$4 sm:$0xff]  }
  0x7f   :  { %1036 = vmatprep.subr.bf16.mxu0 %v1860_v53  ;;  %1117 = vmatpush1.bf16.msra.mxu1 %v1855_v54  ;;  %v1917_v53 = vld [vmem:[#allocation7 + $0x2ac] ss:$16 sps:$4 sm:$0xff]   ;;  %v1912_v54 = vld [vmem:[#allocation7 + $0x2a0] ss:$16 sps:$4 sm:$0xff]  }
  0x80   :  { %1118 = vmatprep.subr.bf16.mxu1 %v1863_v55  ;;  %v1915_v55 = vld [vmem:[#allocation7 + $0x2a8] ss:$16 sps:$4 sm:$0xff]  }
  0x82   :  { %1037 = vmatpush1.bf16.msra.mxu0 %v1858_v56  ;;  %v1920_v56 = vld [vmem:[#allocation7 + $0x2c4] ss:$16 sps:$4 sm:$0xff]  }
  0x83   :  { %1038 = vmatprep.subr.bf16.mxu0 %v1866_v57  ;;  %1119 = vmatpush1.bf16.msra.mxu1 %v1861_v58  ;;  %v1923_v57 = vld [vmem:[#allocation7 + $0x2cc] ss:$16 sps:$4 sm:$0xff]   ;;  %v1918_v58 = vld [vmem:[#allocation7 + $0x2c0] ss:$16 sps:$4 sm:$0xff]  }
  0x84   :  { %1120 = vmatprep.subr.bf16.mxu1 %v1869_v59  ;;  %v1921_v59 = vld [vmem:[#allocation7 + $0x2c8] ss:$16 sps:$4 sm:$0xff]  }
  0x86   :  { %1039 = vmatpush1.bf16.msra.mxu0 %v1864_v60  ;;  %v1926_v60 = vld [vmem:[#allocation7 + $0x2e4] ss:$16 sps:$4 sm:$0xff]  }
  0x87   :  { %1121 = vmatpush1.bf16.msra.mxu1 %v1867_v61  ;;  %1040 = vmatprep.subr.bf16.mxu0 %v1872_v62  ;;  %v1929_v61 = vld [vmem:[#allocation7 + $0x2ec] ss:$16 sps:$4 sm:$0xff]   ;;  %v1924_v62 = vld [vmem:[#allocation7 + $0x2e0] ss:$16 sps:$4 sm:$0xff]  }
  0x88   :  { %1122 = vmatprep.subr.bf16.mxu1 %v1875_v63  ;;  %v1927_v63 = vld [vmem:[#allocation7 + $0x2e8] ss:$16 sps:$4 sm:$0xff]  }
  0x8a   :  { %1041 = vmatpush1.bf16.msra.mxu0 %v1870_v0  ;;  %v1932_v0 = vld [vmem:[#allocation7 + $0x304] ss:$16 sps:$4 sm:$0xff]  }
  0x8b   :  { %1123 = vmatpush1.bf16.msra.mxu1 %v1873_v1  ;;  %1042 = vmatprep.subr.bf16.mxu0 %v1878_v2  ;;  %v1935_v1 = vld [vmem:[#allocation7 + $0x30c] ss:$16 sps:$4 sm:$0xff]   ;;  %v1930_v2 = vld [vmem:[#allocation7 + $0x300] ss:$16 sps:$4 sm:$0xff]  }
  0x8c   :  { %1124 = vmatprep.subr.bf16.mxu1 %v1881_v3  ;;  %v1933_v3 = vld [vmem:[#allocation7 + $0x308] ss:$16 sps:$4 sm:$0xff]  }
  0x8e   :  { %1043 = vmatpush1.bf16.msra.mxu0 %v1876_v4  ;;  %v1938_v4 = vld [vmem:[#allocation7 + $0x324] ss:$16 sps:$4 sm:$0xff]  }
  0x8f   :  { %1125 = vmatpush1.bf16.msra.mxu1 %v1879_v5  ;;  %1053 = vmatprep.subr.bf16.mxu0 %v1884_v6  ;;  %v1941_v5 = vld [vmem:[#allocation7 + $0x32c] ss:$16 sps:$4 sm:$0xff]   ;;  %v1936_v6 = vld [vmem:[#allocation7 + $0x320] ss:$16 sps:$4 sm:$0xff]  }
  0x90   :  { %1135 = vmatprep.subr.bf16.mxu1 %v1887_v7  ;;  %v1939_v7 = vld [vmem:[#allocation7 + $0x328] ss:$16 sps:$4 sm:$0xff]  }
 0x124   :  { %v166_v16 = vpop.f32.mrb[0].mxu0 }
 0x125   :  { %v167_v18 = vadd.f32 %v166_v16, %v91_v14  ;;  %v168_v19 = vpop.f32.mrb[1].mxu0  ;;  %v2253_v22 = vpop.f32.mrb[0].mxu1  ;;  %v1947_v14 = vld [vmem:[#allocation7 + $0x34c] ss:$16 sps:$4 sm:$0xff]   ;;  %v1945_v16 = vld [vmem:[#allocation7 + $0x348] ss:$16 sps:$4 sm:$0xff]  }
 0x126   :  { %v169_v20 = vadd.f32 %v168_v19, %v95_v15  ;;  %v170_v21 = vpop.f32.mrb[2].mxu0  ;;  %v209_v25 = vpop.f32.mrb[1].mxu1  ;;  %v1942_v15 = vld [vmem:[#allocation7 + $0x340] ss:$16 sps:$4 sm:$0xff]  }
 0x127   :  { %v214_v23 = vmax.f32 %v167_v18, 0.0  ;;  %v171_v24 = vpop.f32.mrb[3].mxu0  ;;  %v210_v27 = vadd.f32 %v209_v25, %v103_v17  ;;  %v211_v28 = vpop.f32.mrb[2].mxu1  ;;  %v1950_v17 = vld [vmem:[#allocation7 + $0x364] ss:$16 sps:$4 sm:$0xff]  }
 0x128   :  { %v215_v26 = vmax.f32 %v169_v20, 0.0  ;;  %v212_v29 = vpop.f32.mrb[3].mxu1  ;;  %v1953_v18 = vld [vmem:[#allocation7 + $0x36c] ss:$16 sps:$4 sm:$0xff]   ;;  %v1948_v19 = vld [vmem:[#allocation7 + $0x360] ss:$16 sps:$4 sm:$0xff]  }
 0x129   :  { %v217_v33 = vmax.f32 %v210_v27, 0.0  ;;  %v218_v34 = vpack.c.bf16 %v214_v23, %v214_v23  ;;  %v1951_v20 = vld [vmem:[#allocation7 + $0x368] ss:$16 sps:$4 sm:$0xff]   ;;  %v1956_v21 = vld [vmem:[#allocation7 + $0x384] ss:$16 sps:$4 sm:$0xff]  }
 0x12a   :  { %v219_v30 = vpack.c.bf16 %v215_v26, %v215_v26  ;;  %v1959_v23 = vld [vmem:[#allocation7 + $0x38c] ss:$16 sps:$4 sm:$0xff]   ;;  %v1954_v24 = vld [vmem:[#allocation7 + $0x380] ss:$16 sps:$4 sm:$0xff]   ;;  %v1957_v25 = vld [vmem:[#allocation7 + $0x388] ss:$16 sps:$4 sm:$0xff]  }
 0x12b   :  { %v221_v37 = vpack.c.bf16 %v217_v33, %v217_v33  ;;  %v98_v26 = vsub.s32 2, %v2234_v9  ;;  %v1962_v27 = vld [vmem:[#allocation7 + $0x3a4] ss:$16 sps:$4 sm:$0xff]   ;;  %v1965_v28 = vld [vmem:[#allocation7 + $0x3ac] ss:$16 sps:$4 sm:$0xff]  }
 0x12c   :  { %1044 = vmatprep.mubr.bf16.mxu0 %v219_v30  ;;  %1126 = vmatprep.mubr.bf16.mxu1 %v219_v30  ;;  %v1960_v29 = vld [vmem:[#allocation7 + $0x3a0] ss:$16 sps:$4 sm:$0xff]   ;;  %v1963_v30 = vld [vmem:[#allocation7 + $0x3a8] ss:$16 sps:$4 sm:$0xff]   ;;  %v1971_v33 = vld [vmem:[#allocation7 + $0x3cc] ss:$16 sps:$4 sm:$0xff]  }
 0x12d   :  { %1045 = vmatmul.mubr.bf16.vlgmr.msra.gmra.mrb[4].mxu0 %v218_v34  ;;  %1127 = vmatmul.mubr.bf16.vlgmr.msra.gmra.mrb[4].mxu1 %v218_v34  ;;  %v1966_v34 = vld [vmem:[#allocation7 + $0x3c0] ss:$16 sps:$4 sm:$0xff]  }
 0x12e   :  { %1054 = vmatpush1.bf16.msra.mxu0 %v1882_v31  ;;  %1136 = vmatpush1.bf16.msra.mxu1 %v1885_v32  ;;  %v99_v31 = vrot.slane %v2240_v11, %v98_v26  ;;  %v1968_v32 = vld [vmem:[#allocation7 + $0x3c4] ss:$16 sps:$4 sm:$0xff]  }
 0x12f   :  { %1055 = vmatprep.subr.bf16.mxu0 %v1890_v35  ;;  %1137 = vmatprep.subr.bf16.mxu1 %v1893_v36  ;;  %v1969_v35 = vld [vmem:[#allocation7 + $0x3c8] ss:$16 sps:$4 sm:$0xff]   ;;  %v1978_v11 = vld [vmem:[#allocation8 + $0x40] sm:$0xff]  }
 0x130   :  { %1085 = vmatprep.mubr.bf16.mxu0 %v221_v37  ;;  %1167 = vmatprep.mubr.bf16.mxu1 %v221_v37  ;;  %v208_v36 = vadd.f32 %v2253_v22, %v99_v31  ;;  %v1974_v37 = vld [vmem:[#allocation7 + $0x3e4] ss:$16 sps:$4 sm:$0xff]   ;;  %v1982_v22 = vld [vmem:[#allocation8 + $0x48] sm:$0xff]  }
 0x132   :  { %1056 = vmatpush1.bf16.msra.mxu0 %v1888_v38  ;;  %1138 = vmatpush1.bf16.msra.mxu1 %v1891_v39  ;;  %v1977_v38 = vld [vmem:[#allocation7 + $0x3ec] ss:$16 sps:$4 sm:$0xff]   ;;  %v1972_v39 = vld [vmem:[#allocation7 + $0x3e0] ss:$16 sps:$4 sm:$0xff]  }
 0x133   :  { %1057 = vmatprep.subr.bf16.mxu0 %v1896_v40  ;;  %1139 = vmatprep.subr.bf16.mxu1 %v1899_v41  ;;  %v1975_v40 = vld [vmem:[#allocation7 + $0x3e8] ss:$16 sps:$4 sm:$0xff]   ;;  %v216_v41 = vmax.f32 %v208_v36, 0.0 }
 0x136   :  { %1058 = vmatpush1.bf16.msra.mxu0 %v1894_v42  ;;  %1140 = vmatpush1.bf16.msra.mxu1 %v1897_v43  ;;  %v1979_v42 = vld [vmem:[#allocation8 + $0xc0] sm:$0xff]  }
 0x137   :  { %1059 = vmatprep.subr.bf16.mxu0 %v1902_v44  ;;  %1141 = vmatprep.subr.bf16.mxu1 %v1905_v45  ;;  %v1980_v43 = vld [vmem:[#allocation8] sm:$0xff]   ;;  %v220_v45 = vpack.c.bf16 %v216_v41, %v216_v41 }
 0x138   :  { %v1981_v44 = vld [vmem:[#allocation8 + $0x80] sm:$0xff]  }
 0x13a   :  { %1060 = vmatpush1.bf16.msra.mxu0 %v1900_v46  ;;  %1142 = vmatpush1.bf16.msra.mxu1 %v1903_v47  ;;  %v1983_v46 = vld [vmem:[#allocation8 + $0xc8] sm:$0xff]  }
 0x13b   :  { %1061 = vmatprep.subr.bf16.mxu0 %v1908_v48  ;;  %1143 = vmatprep.subr.bf16.mxu1 %v1911_v49  ;;  %v1984_v47 = vld [vmem:[#allocation8 + $0x8] sm:$0xff]   ;;  %v1986_v49 = vld [vmem:[#allocation8 + $0x50] sm:$0xff]  }
 0x13c   :  { %v1985_v48 = vld [vmem:[#allocation8 + $0x88] sm:$0xff]  }
 0x13e   :  { %1062 = vmatpush1.bf16.msra.mxu0 %v1906_v50  ;;  %1144 = vmatpush1.bf16.msra.mxu1 %v1909_v51  ;;  %v1987_v50 = vld [vmem:[#allocation8 + $0xd0] sm:$0xff]  }
 0x13f   :  { %1063 = vmatprep.subr.bf16.mxu0 %v1914_v52  ;;  %1145 = vmatprep.subr.bf16.mxu1 %v1917_v53  ;;  %v1988_v51 = vld [vmem:[#allocation8 + $0x10] sm:$0xff]   ;;  %v1990_v53 = vld [vmem:[#allocation8 + $0x58] sm:$0xff]  }
 0x140   :  { %v1989_v52 = vld [vmem:[#allocation8 + $0x90] sm:$0xff]  }
 0x142   :  { %1064 = vmatpush1.bf16.msra.mxu0 %v1912_v54  ;;  %1146 = vmatpush1.bf16.msra.mxu1 %v1915_v55  ;;  %v1991_v54 = vld [vmem:[#allocation8 + $0xd8] sm:$0xff]  }
 0x143   :  { %1065 = vmatprep.subr.bf16.mxu0 %v1920_v56  ;;  %1147 = vmatprep.subr.bf16.mxu1 %v1923_v57  ;;  %v1992_v55 = vld [vmem:[#allocation8 + $0x18] sm:$0xff]   ;;  %v1994_v57 = vld [vmem:[#allocation8 + $0x60] sm:$0xff]  }
 0x144   :  { %v1993_v56 = vld [vmem:[#allocation8 + $0x98] sm:$0xff]  }
 0x146   :  { %1066 = vmatpush1.bf16.msra.mxu0 %v1918_v58  ;;  %1148 = vmatpush1.bf16.msra.mxu1 %v1921_v59  ;;  %v1995_v58 = vld [vmem:[#allocation8 + $0xe0] sm:$0xff]  }
 0x147   :  { %1067 = vmatprep.subr.bf16.mxu0 %v1926_v60  ;;  %1149 = vmatprep.subr.bf16.mxu1 %v1929_v61  ;;  %v1996_v59 = vld [vmem:[#allocation8 + $0x20] sm:$0xff]   ;;  %v1998_v61 = vld [vmem:[#allocation8 + $0x68] sm:$0xff]  }
 0x148   :  { %v1997_v60 = vld [vmem:[#allocation8 + $0xa0] sm:$0xff]  }
 0x14a   :  { %1068 = vmatpush1.bf16.msra.mxu0 %v1924_v62  ;;  %1150 = vmatpush1.bf16.msra.mxu1 %v1927_v63  ;;  %v1999_v62 = vld [vmem:[#allocation8 + $0xe8] sm:$0xff]  }
 0x14b   :  { %1069 = vmatprep.subr.bf16.mxu0 %v1932_v0  ;;  %1151 = vmatprep.subr.bf16.mxu1 %v1935_v1  ;;  %v2000_v63 = vld [vmem:[#allocation8 + $0x28] sm:$0xff]   ;;  %v2002_v1 = vld [vmem:[#allocation8 + $0x70] sm:$0xff]  }
 0x14c   :  { %v2001_v0 = vld [vmem:[#allocation8 + $0xa8] sm:$0xff]  }
 0x14e   :  { %1070 = vmatpush1.bf16.msra.mxu0 %v1930_v2  ;;  %1152 = vmatpush1.bf16.msra.mxu1 %v1933_v3  ;;  %v2003_v2 = vld [vmem:[#allocation8 + $0xf0] sm:$0xff]  }
 0x14f   :  { %1071 = vmatprep.subr.bf16.mxu0 %v1938_v4  ;;  %1153 = vmatprep.subr.bf16.mxu1 %v1941_v5  ;;  %v2004_v3 = vld [vmem:[#allocation8 + $0x30] sm:$0xff]   ;;  %v2006_v5 = vld [vmem:[#allocation8 + $0x78] sm:$0xff]  }
 0x150   :  { %v2005_v4 = vld [vmem:[#allocation8 + $0xb0] sm:$0xff]  }
 0x152   :  { %1072 = vmatpush1.bf16.msra.mxu0 %v1936_v6  ;;  %1154 = vmatpush1.bf16.msra.mxu1 %v1939_v7  ;;  %v2007_v6 = vld [vmem:[#allocation8 + $0xf8] sm:$0xff]  }
 0x153   :  { %1073 = vmatprep.subr.bf16.mxu0 %v1944_v8  ;;  %1155 = vmatprep.subr.bf16.mxu1 %v1947_v14  ;;  %v2008_v7 = vld [vmem:[#allocation8 + $0x38] sm:$0xff]   ;;  %v350_v14 = vld [vmem:[%s2290_s4] sm:$0xf] }
 0x154   :  { %v2009_v8 = vld [vmem:[#allocation8 + $0xb8] sm:$0xff]  }
 0x156   :  { %1074 = vmatpush1.bf16.msra.mxu0 %v1942_v15  ;;  %1156 = vmatpush1.bf16.msra.mxu1 %v1945_v16  ;;  %v355_v15 = vrot.slane %v350_v14, %v90_v10  ;;  %v363_v16 = vrot.slane %v350_v14, %v98_v26 }
 0x157   :  { %1075 = vmatprep.subr.bf16.mxu0 %v1950_v17  ;;  %1157 = vmatprep.subr.bf16.mxu1 %v1953_v18  ;;  %v359_v17 = vrot.slane %v350_v14, %v94_v12  ;;  %v367_v18 = vrot.slane %v350_v14, %v102_v13 }
 0x15a   :  { %1076 = vmatpush1.bf16.msra.mxu0 %v1948_v19  ;;  %1158 = vmatpush1.bf16.msra.mxu1 %v1951_v20 }
 0x15b   :  { %1077 = vmatprep.subr.bf16.mxu0 %v1956_v21  ;;  %1159 = vmatprep.subr.bf16.mxu1 %v1959_v23 }
 0x15e   :  { %1078 = vmatpush1.bf16.msra.mxu0 %v1954_v24  ;;  %1160 = vmatpush1.bf16.msra.mxu1 %v1957_v25 }
 0x15f   :  { %1079 = vmatprep.subr.bf16.mxu0 %v1962_v27  ;;  %1161 = vmatprep.subr.bf16.mxu1 %v1965_v28 }
 0x162   :  { %1080 = vmatpush1.bf16.msra.mxu0 %v1960_v29  ;;  %1162 = vmatpush1.bf16.msra.mxu1 %v1963_v30 }
 0x163   :  { %1081 = vmatprep.subr.bf16.mxu0 %v1968_v32  ;;  %1163 = vmatprep.subr.bf16.mxu1 %v1971_v33 }
 0x166   :  { %1082 = vmatpush1.bf16.msra.mxu0 %v1966_v34  ;;  %1164 = vmatpush1.bf16.msra.mxu1 %v1969_v35 }
 0x167   :  { %1083 = vmatprep.subr.bf16.mxu0 %v1974_v37  ;;  %1165 = vmatprep.subr.bf16.mxu1 %v1977_v38  ;;  %v1681_v38 = vld [vmem:[%s2292_s6] ss:$0 sm:$0xff] }
 0x16a   :  { %1084 = vmatpush1.bf16.msra.mxu0 %v1972_v39  ;;  %1166 = vmatpush1.bf16.msra.mxu1 %v1975_v40 }
 0x16b   :  { %1714 = vmatprep.subr.bf16.mxu0 %v1978_v11  ;;  %1736 = vmatprep.subr.bf16.mxu1 %v1979_v42 }
 0x16d   :  { %1086 = vmatmul.mubr.bf16.vlgmr.msra.gmra.mrb[4].mxu0 %v220_v45  ;;  %1168 = vmatmul.mubr.bf16.vlgmr.msra.gmra.mrb[4].mxu1 %v220_v45 }
 0x16e   :  { %1715 = vmatpush3.bf16.msra.mxu0 %v1980_v43  ;;  %1737 = vmatpush3.bf16.msra.mxu1 %v1981_v44 }
 0x16f   :  { %1716 = vmatprep.subr.bf16.mxu0 %v1982_v22  ;;  %1738 = vmatprep.subr.bf16.mxu1 %v1983_v46 }
 0x172   :  { %1717 = vmatpush3.bf16.msra.mxu0 %v1984_v47  ;;  %1739 = vmatpush3.bf16.msra.mxu1 %v1985_v48 }
 0x173   :  { %1718 = vmatprep.subr.bf16.mxu0 %v1986_v49  ;;  %1740 = vmatprep.subr.bf16.mxu1 %v1987_v50 }
 0x176   :  { %1719 = vmatpush3.bf16.msra.mxu0 %v1988_v51  ;;  %1741 = vmatpush3.bf16.msra.mxu1 %v1989_v52 }
 0x177   :  { %1720 = vmatprep.subr.bf16.mxu0 %v1990_v53  ;;  %1742 = vmatprep.subr.bf16.mxu1 %v1991_v54 }
 0x17a   :  { %1721 = vmatpush3.bf16.msra.mxu0 %v1992_v55  ;;  %1743 = vmatpush3.bf16.msra.mxu1 %v1993_v56 }
 0x17b   :  { %1722 = vmatprep.subr.bf16.mxu0 %v1994_v57  ;;  %1744 = vmatprep.subr.bf16.mxu1 %v1995_v58 }
 0x17e   :  { %1723 = vmatpush3.bf16.msra.mxu0 %v1996_v59  ;;  %1745 = vmatpush3.bf16.msra.mxu1 %v1997_v60 }
 0x17f   :  { %1724 = vmatprep.subr.bf16.mxu0 %v1998_v61  ;;  %1746 = vmatprep.subr.bf16.mxu1 %v1999_v62 }
 0x182   :  { %1725 = vmatpush3.bf16.msra.mxu0 %v2000_v63  ;;  %1747 = vmatpush3.bf16.msra.mxu1 %v2001_v0 }
 0x183   :  { %1726 = vmatprep.subr.bf16.mxu0 %v2002_v1  ;;  %1748 = vmatprep.subr.bf16.mxu1 %v2003_v2 }
 0x186   :  { %1727 = vmatpush3.bf16.msra.mxu0 %v2004_v3  ;;  %1749 = vmatpush3.bf16.msra.mxu1 %v2005_v4 }
 0x187   :  { %1728 = vmatprep.subr.bf16.mxu0 %v2006_v5  ;;  %1750 = vmatprep.subr.bf16.mxu1 %v2007_v6 }
 0x18a   :  { %1729 = vmatpush3.bf16.msra.mxu0 %v2008_v7  ;;  %1751 = vmatpush3.bf16.msra.mxu1 %v2009_v8 }
 0x240   :  { %v1087_v19 = vpop.f32.mrb[4].mxu0  ;;  %v1169_v20 = vpop.f32.mrb[4].mxu1 }
 0x241   :  { %v1758_v21 = vadd.f32 %v1087_v19, %v355_v15  ;;  %v1760_v23 = vadd.f32 %v1169_v20, %v363_v16  ;;  %v1089_v24 = vpop.f32.mrb[5].mxu0  ;;  %v1171_v25 = vpop.f32.mrb[5].mxu1 }
 0x242   :  { %v1759_v27 = vadd.f32 %v1089_v24, %v359_v17  ;;  %v1761_v28 = vadd.f32 %v1171_v25, %v367_v18  ;;  %v1091_v29 = vpop.f32.mrb[6].mxu0  ;;  %v1173_v30 = vpop.f32.mrb[6].mxu1 }
 0x243   :  { %v1176_v10 = vmax.f32 %v1758_v21, 0.0  ;;  %v1178_v31 = vmax.f32 %v1760_v23, 0.0  ;;  %v1092_v32 = vpop.f32.mrb[7].mxu0  ;;  %v1174_v26 = vpop.f32.mrb[7].mxu1 }
 0x244   :  { %v1177_v33 = vmax.f32 %v1759_v27, 0.0  ;;  %v1179_v34 = vmax.f32 %v1761_v28, 0.0 }
 0x245   :  { %v1180_v9 = vpack.c.bf16 %v1176_v10, %v1176_v10  ;;  %v1182_v13 = vpack.c.bf16 %v1178_v31, %v1178_v31 }
 0x246   :  { %v1181_v12 = vpack.c.bf16 %v1177_v33, %v1177_v33  ;;  %v1183_v35 = vpack.c.bf16 %v1179_v34, %v1179_v34 }
 0x248   :  { %1479 = vmatprep.mubr.bf16.mxu0 %v1181_v12  ;;  %1519 = vmatprep.mubr.bf16.mxu1 %v1183_v35 }
 0x249   :  { %1480 = vmatmul.mubr.bf16.vlgmr.msra.gmra.mrb[8].mxu0 %v1180_v9  ;;  %1520 = vmatmul.mubr.bf16.vlgmr.msra.gmra.mrb[8].mxu1 %v1182_v13 }
 0x31c   :  { %v1730_v36 = vpop.f32.mrb[8].mxu0  ;;  %v1752_v37 = vpop.f32.mrb[8].mxu1 }
 0x31d   :  { %v1731_v39 = vpop.f32.mrb[9].mxu0  ;;  %v1753_v40 = vpop.f32.mrb[9].mxu1 }
 0x31e   :  { %v1732_v41 = vadd.f32 %v1731_v39, %v1730_v36  ;;  %v1754_v11 = vadd.f32 %v1753_v40, %v1752_v37  ;;  %v1733_v42 = vpop.f32.mrb[10].mxu0  ;;  %v1755_v43 = vpop.f32.mrb[10].mxu1 }
 0x31f   :  { %v1734_v44 = vpop.f32.mrb[11].mxu0  ;;  %v1756_v45 = vpop.f32.mrb[11].mxu1 }
 0x320   :  { %v1482_v22 = vadd.f32 %v1732_v41, %v1681_v38 }
 0x322   :  { %v1522_v46 = vadd.f32 %v1754_v11, %v1482_v22 }
 0x324   :  { %2010 = vtanh.f32 %v1522_v46 }
 0x32e   :  { %v2011_v47 = vpop.eup %2010 }
 0x32f   :  { %1529 = vst.msk [vmem:[#allocation10] sm:$0x3] %vm1528_vm1, %v2011_v47 }
 0x330   :  { %2111 = shalt.err (!%p2108_p8)
}
 0x331   :  { %s2112_s13 = scalar_lea.hbm %s2293_s7, 32 }
 0x332   :  { %p2113_p9 = scmp.ne.s32.totalorder %s2293_s7, %s2112_s13  ;;  %p2116_p10 = scmp.lt.u32.totalorder %s2112_s13, %s2293_s7 }
 0x334   :  { %p2118_p11 = pnand %p2116_p10, %p2113_p9 }
 0x336   :  { %2121 = shalt.err (!%p2118_p11)
}
 0x337   :  { %1539 = dma.vmem_to_hbm [thread:$0]  %s1537_s8, 32, %s2293_s7, [#allocation4]  }
 0x338   :  { %2128 = dma.done.wait [#allocation4], 32  }
 0x339   :  { %2129 = vsyncadd [#allocation4], 4294967264 }
 0x33a   :  { %1543 = vsyncpa [#allocation3], 1 }
 0x33b   :  { %1544 = vsyncpa [#allocation6], 1 }
 0x33c   :  { %1545 = vsyncpa [#allocation9], 1 }
 0x33d   :  { %1546 = vsyncpa [#allocation4], 1 }

</bundles_post_ra>
